<compile_context>
chip_gen: v7x
topology: tpu7x:2x2x1
jax: 0.10.0
libtpu: 0.0.40
codegen_flags: <defaults>
</compile_context>

<pallas_src>
import jax
import jax.numpy as jnp
from jax.experimental import pallas as pl
from jax.experimental.pallas import tpu as pltpu

IN_FEATURES = 1200
NUM_CLASSES = 2


def logreg_kernel(x_ref, w_ref, b_ref, o_ref):
    # x_ref: (TM, 1200) VMEM   w_ref: (2, 1200) VMEM (resident)
    # b_ref: (2,) SMEM         o_ref: (TM, 2) VMEM
    x = x_ref[...].astype(jnp.float32)                                  # (TM, 1200)
    wd = w_ref[0:1, :].astype(jnp.float32) - w_ref[1:2, :].astype(jnp.float32)  # (1, 1200)
    bd = b_ref[0] - b_ref[1]                                            # scalar (SMEM)

    # logit difference d = z0 - z1 : VPU multiply + XLU lane reduction
    d = jnp.sum(x * wd, axis=-1, keepdims=True) + bd                    # (TM, 1)

    # numerically stable 2-class log_softmax from the difference only:
    #   out0 = min(d, 0) - log(1 + exp(-|d|))
    #   out1 = min(-d, 0) - log(1 + exp(-|d|))
    lse = jnp.log(1.0 + jnp.exp(-jnp.abs(d)))                           # (TM, 1), EUP
    o_ref[:, 0:1] = (jnp.minimum(d, 0.0) - lse).astype(o_ref.dtype)
    o_ref[:, 1:2] = (jnp.minimum(-d, 0.0) - lse).astype(o_ref.dtype)


def log_reg_forward(x_nchw, weight, bias, *, block_rows=2048):
    """x_nchw: (B, C, H, W) with C*H*W == 1200.
    weight: (2, 1200) (nn.Linear layout), bias: (2,). Returns (B, 2) log-probs."""
    B = x_nchw.shape[0]
    x_flat = x_nchw.reshape(B, -1)
    assert x_flat.shape[1] == IN_FEATURES

    # Batch tile: multiple of 8 sublanes when possible, capped at block_rows.
    if B >= 8:
        tm = min(block_rows, (B // 8) * 8)
    else:
        tm = B                         # block == full array extent is always legal
    b_pad = pl.cdiv(B, tm) * tm
    if b_pad != B:
        x_flat = jnp.pad(x_flat, ((0, b_pad - B), (0, 0)))

    out = pl.pallas_call(
        logreg_kernel,
        out_shape=jax.ShapeDtypeStruct((b_pad, NUM_CLASSES), jnp.float32),
        grid=(b_pad // tm,),
        in_specs=[
            # streamed, double-buffered x tiles
            pl.BlockSpec((tm, IN_FEATURES), lambda i: (i, 0)),
            # resident lane-major weight
            pl.BlockSpec((NUM_CLASSES, IN_FEATURES), lambda i: (0, 0)),
            # bias as scalars in SMEM (no VMEM stream / broadcast tile)
            pl.BlockSpec(memory_space=pltpu.MemorySpace.SMEM),
        ],
        out_specs=pl.BlockSpec((tm, NUM_CLASSES), lambda i: (i, 0)),
        compiler_params=pltpu.CompilerParams(
            dimension_semantics=("parallel",),
            vmem_limit_bytes=40 * 1024 * 1024,
        ),
    )(x_flat, weight, bias)
    return out[:B]


if __name__ == "__main__":
    key = jax.random.PRNGKey(0)
    kx, kw, kb = jax.random.split(key, 3)

    # (B, C, H, W) = (4, 3, 20, 20) -> flattens to 1200 features.
    B, C, H, W = 4, 3, 20, 20
    assert C * H * W == IN_FEATURES
    x = jax.random.normal(kx, (B, C, H, W), dtype=jnp.float32)

    # nn.Linear(1200, 2)-style init: U(-1/sqrt(fan_in), 1/sqrt(fan_in)).
    bound = 1.0 / jnp.sqrt(jnp.float32(IN_FEATURES))
    weight = jax.random.uniform(kw, (NUM_CLASSES, IN_FEATURES),
                                minval=-bound, maxval=bound, dtype=jnp.float32)
    bias = jax.random.uniform(kb, (NUM_CLASSES,),
                              minval=-bound, maxval=bound, dtype=jnp.float32)

    out = jax.block_until_ready(log_reg_forward(x, weight, bias))

    # reference check against plain JAX (exact-precision matmul)
    ref = jax.nn.log_softmax(
        jnp.dot(x.reshape(B, -1), weight.T,
                precision=jax.lax.Precision.HIGHEST) + bias, axis=-1)
    assert out.shape == (B, NUM_CLASSES)
    assert jnp.allclose(out, ref, atol=1e-4, rtol=1e-4)
    assert jnp.allclose(jnp.sum(jnp.exp(out), axis=1), 1.0, atol=1e-5)

    # exercise the multi-tile pipelined path (grid > 1, ragged batch padded)
    B2 = 40
    x2 = jax.random.normal(kx, (B2, C, H, W), dtype=jnp.float32)
    out2 = jax.block_until_ready(log_reg_forward(x2, weight, bias, block_rows=16))
    ref2 = jax.nn.log_softmax(
        jnp.dot(x2.reshape(B2, -1), weight.T,
                precision=jax.lax.Precision.HIGHEST) + bias, axis=-1)
    assert out2.shape == (B2, NUM_CLASSES)
    assert jnp.allclose(out2, ref2, atol=1e-4, rtol=1e-4)

    print("KERNEL_OK")
</pallas_src>

<mosaic_0001>
module attributes {stable_mosaic.version = 11 : i64} {
  func.func @logreg_kernel(%arg0: i32, %arg1: memref<4x1200xf32, #tpu.memory_space<vmem>>, %arg2: memref<2x1200xf32, #tpu.memory_space<vmem>>, %arg3: memref<2xf32, #tpu.memory_space<smem>>, %arg4: memref<4x2xf32, #tpu.memory_space<vmem>>) attributes {dimension_semantics = [#tpu.dimension_semantics<parallel>], iteration_bounds = array<i64: 1>, scalar_prefetch = 0 : i64, scratch_operands = 0 : i64, tpu.core_type = #tpu.core_type<tc>, window_params = [{transform_indices = @transform_0, window_bounds = array<i64: 4, 1200>}, {pipeline_mode = #tpu.pipeline_mode<synchronous>, transform_indices = @transform_1, window_bounds = array<i64: 2, 1200>}, {transform_indices = @transform_2, window_bounds = array<i64: 2>}, {transform_indices = @transform_3, window_bounds = array<i64: 4, 2>}]} {
    %c0 = arith.constant 0 : index
    %c0_0 = arith.constant 0 : index
    %0 = vector.load %arg1[%c0, %c0_0] : memref<4x1200xf32, #tpu.memory_space<vmem>>, vector<4x1200xf32>
    %c0_1 = arith.constant 0 : index
    %c0_2 = arith.constant 0 : index
    %1 = vector.load %arg2[%c0_1, %c0_2] : memref<2x1200xf32, #tpu.memory_space<vmem>>, vector<1x1200xf32>
    %c1 = arith.constant 1 : index
    %c0_3 = arith.constant 0 : index
    %2 = vector.load %arg2[%c1, %c0_3] : memref<2x1200xf32, #tpu.memory_space<vmem>>, vector<1x1200xf32>
    %3 = arith.subf %1, %2 : vector<1x1200xf32>
    %c0_4 = arith.constant 0 : index
    %4 = memref.load %arg3[%c0_4] : memref<2xf32, #tpu.memory_space<smem>>
    %c1_5 = arith.constant 1 : index
    %5 = memref.load %arg3[%c1_5] : memref<2xf32, #tpu.memory_space<smem>>
    %6 = arith.subf %4, %5 : f32
    %7 = vector.broadcast %3 : vector<1x1200xf32> to vector<4x1200xf32>
    %8 = arith.mulf %0, %7 : vector<4x1200xf32>
    %cst = arith.constant dense<0.000000e+00> : vector<4xf32>
    %9 = vector.multi_reduction <add>, %8, %cst [1] : vector<4x1200xf32> to vector<4xf32>
    %10 = vector.shape_cast %9 : vector<4xf32> to vector<4x1xf32>
    %11 = vector.broadcast %6 : f32 to vector<4x1xf32>
    %12 = arith.addf %10, %11 : vector<4x1xf32>
    %13 = math.absf %12 : vector<4x1xf32>
    %cst_6 = arith.constant 0.000000e+00 : f32
    %14 = vector.broadcast %cst_6 : f32 to vector<4x1xf32>
    %15 = arith.subf %14, %13 : vector<4x1xf32>
    %16 = math.exp %15 : vector<4x1xf32>
    %cst_7 = arith.constant 1.000000e+00 : f32
    %17 = vector.broadcast %cst_7 : f32 to vector<4x1xf32>
    %18 = arith.addf %17, %16 : vector<4x1xf32>
    %19 = math.log %18 : vector<4x1xf32>
    %cst_8 = arith.constant 0.000000e+00 : f32
    %20 = vector.broadcast %cst_8 : f32 to vector<4x1xf32>
    %21 = arith.minimumf %12, %20 : vector<4x1xf32>
    %22 = arith.subf %21, %19 : vector<4x1xf32>
    %c0_9 = arith.constant 0 : index
    %c0_10 = arith.constant 0 : index
    %23 = vector.load %arg4[%c0_9, %c0_10] : memref<4x2xf32, #tpu.memory_space<vmem>>, vector<4x1xf32>
    tpu.vector_store %arg4[%c0_9, %c0_10], %22 {strides = array<i32>} : memref<4x2xf32, #tpu.memory_space<vmem>>, vector<4x1xf32>,
    %cst_11 = arith.constant 0.000000e+00 : f32
    %24 = vector.broadcast %cst_11 : f32 to vector<4x1xf32>
    %25 = arith.subf %24, %12 : vector<4x1xf32>
    %cst_12 = arith.constant 0.000000e+00 : f32
    %26 = vector.broadcast %cst_12 : f32 to vector<4x1xf32>
    %27 = arith.minimumf %25, %26 : vector<4x1xf32>
    %28 = arith.subf %27, %19 : vector<4x1xf32>
    %c0_13 = arith.constant 0 : index
    %c1_14 = arith.constant 1 : index
    %29 = vector.load %arg4[%c0_13, %c1_14] : memref<4x2xf32, #tpu.memory_space<vmem>>, vector<4x1xf32>
    tpu.vector_store %arg4[%c0_13, %c1_14], %28 {strides = array<i32>} : memref<4x2xf32, #tpu.memory_space<vmem>>, vector<4x1xf32>,
    return
  }
  func.func @transform_0(%arg0: i32) -> (i32, i32) {
    %c0_i32 = arith.constant 0 : i32
    %c0_i32_0 = arith.constant 0 : i32
    return %arg0, %c0_i32 : i32, i32
  }
  func.func @transform_1(%arg0: i32) -> (i32, i32) {
    %c0_i32 = arith.constant 0 : i32
    %c0_i32_0 = arith.constant 0 : i32
    %c0_i32_1 = arith.constant 0 : i32
    return %c0_i32, %c0_i32_0 : i32, i32
  }
  func.func @transform_2(%arg0: i32) -> i32 {
    %c0_i32 = arith.constant 0 : i32
    %c0_i32_0 = arith.constant 0 : i32
    return %c0_i32 : i32
  }
  func.func @transform_3(%arg0: i32) -> (i32, i32) {
    %c0_i32 = arith.constant 0 : i32
    %c0_i32_0 = arith.constant 0 : i32
    return %arg0, %c0_i32 : i32, i32
  }
}

</mosaic_0001>

<bundles_post_ra>
// kernel: tpu_custom_call.1
= control target key start
LH: loop header
LB: loop body
LE: loop exit
PB: predicated region body
PF: predicated region fallthrough
CT: control target
= control target key end

     0   :  { %8 = vsyncpa [#allocation3], 0  ;;  %s323_s0 = inlined_call_operand.hbm [shape: f32[4,1200], index: 0, kind: input, shape index: {}]   ;;  %s324_s1 = inlined_call_operand.hbm [shape: f32[2,1200], index: 1, kind: input, shape index: {}]   ;;  %s325_s2 = inlined_call_operand.vmem [shape: f32[2], index: 2, kind: input, shape index: {}]   ;;  %s326_s3 = inlined_call_operand.vmem [shape: f32[4,2], index: 3, kind: output, shape index: {}]  }
   0x1   :  { %9 = vsyncpa [#allocation6], 0 }
   0x2   :  { %10 = vsyncpa [#allocation4], 0  ;;  %s258_s12 = smov [#allocation2]   ;;  %s259_s14 = smov [#allocation5]  }
   0x3   :  { %s17_s13 = sshll.u32 %s258_s12, 4  ;;  %s27_s15 = sshll.u32 %s259_s14, 4  ;;  %s18_s13 = int_to_ptr.vmem [resolvable:$true] %s17_s13  ;;  %s28_s15 = int_to_ptr.vmem [resolvable:$true] %s27_s15 }
   0x4   :  { %s196_s18 = scalar_lea.hbm %s323_s0, 640 }
   0x5   :  { %p197_p0 = scmp.ne.s32.totalorder %s323_s0, %s196_s18  ;;  %p200_p1 = scmp.lt.u32.totalorder %s196_s18, %s323_s0 }
   0x7   :  { %p202_p2 = pnand %p200_p1, %p197_p0 }
   0x9   :  { %205 = shalt.err (!%p202_p2)
}
   0xa   :  { %s206_s23 = scalar_lea.vmem %s18_s13, 640  ;;  %p211_p4 = scmp.lt.s32.totalorder %s18_s13, %s18_s13 }
   0xb   :  { %p207_p3 = scmp.ne.s32.totalorder %s18_s13, %s206_s23  ;;  %p212_p5 = scmp.lt.s32.totalorder %s206_s23, %s206_s23 }
   0xd   :  { %p213_p6 = por %p212_p5, %p211_p4 }
   0xf   :  { %p214_p7 = pnand %p213_p6, %p207_p3 }
  0x11   :  { %217 = shalt.err (!%p214_p7)
}
  0x12   :  { %20 = dma.hbm_to_vmem [thread:$0]  %s323_s0, 640, %s18_s13, [#allocation3]  }
  0x13   :  { %s218_s28 = scalar_lea.hbm %s324_s1, 320 }
  0x14   :  { %p219_p8 = scmp.ne.s32.totalorder %s324_s1, %s218_s28  ;;  %p222_p9 = scmp.lt.u32.totalorder %s218_s28, %s324_s1 }
  0x16   :  { %p224_p10 = pnand %p222_p9, %p219_p8 }
  0x18   :  { %227 = shalt.err (!%p224_p10)
}
  0x19   :  { %s228_s6 = scalar_lea.vmem %s28_s15, 320  ;;  %p233_p12 = scmp.lt.s32.totalorder %s28_s15, %s28_s15 }
  0x1a   :  { %p229_p11 = scmp.ne.s32.totalorder %s28_s15, %s228_s6  ;;  %p234_p13 = scmp.lt.s32.totalorder %s228_s6, %s228_s6 }
  0x1c   :  { %p235_p0 = por %p234_p13, %p233_p12 }
  0x1e   :  { %p236_p1 = pnand %p235_p0, %p229_p11 }
  0x20   :  { %239 = shalt.err (!%p236_p1)
}
  0x21   :  { %30 = dma.hbm_to_vmem [thread:$0]  %s324_s1, 320, %s28_s15, [#allocation6]  }
  0x22   :  { %s37_s10 = sshll.u32 %s325_s2, 4  ;;  %s38_s10 = int_to_ptr.vmem [resolvable:$true] %s37_s10 }
  0x23   :  { %s240_s11 = scalar_lea.vmem %s38_s10, 16  ;;  %p245_p3 = scmp.lt.s32.totalorder %s38_s10, %s38_s10 }
  0x24   :  { %p241_p2 = scmp.ne.s32.totalorder %s38_s10, %s240_s11  ;;  %p246_p4 = scmp.lt.s32.totalorder %s240_s11, %s240_s11 }
  0x26   :  { %p247_p5 = por %p246_p4, %p245_p3 }
  0x28   :  { %p248_p6 = pnand %p247_p5, %p241_p2 }
  0x2a   :  { %251 = shalt.err (!%p248_p6)
}
  0x2b   :  { %s260_s12 = smov [#allocation7]  }
  0x2c   :  { %40 = dma.vmem_to_smem %s38_s10, 16, %s260_s12, [#allocation4]  }
  0x2d   :  { %252 = dma.done.wait [#allocation3], 640  }
  0x2e   :  { %253 = vsyncadd [#allocation3], 4294966656 }
  0x2f   :  { %254 = dma.done.wait [#allocation6], 320  }
  0x30   :  { %255 = vsyncadd [#allocation6], 4294966976 }
  0x31   :  { %256 = dma.done.wait [#allocation4], 16  }
  0x32   :  { %257 = vsyncadd [#allocation4], 4294967280 }
  0x33   :  { %50 = sfence }
  0x34   :  { %v70_v0 = vlaneseq  ;;  %v56_v1 = vld [vmem:[#allocation5] ss:$2 sm:$0xff]  ;;  %v60_v2 = vld [vmem:[#allocation5 + $0x1] ss:$2 sm:$0xff]  ;;  %v51_v18 = vld [vmem:[#allocation2] sm:$0xff]  ;;  %vm140_vm0 = vcmask 1043456  }
  0x35   :  { %v58_v4 = vld [vmem:[#allocation5 + $0x10] ss:$2 sm:$0x3]  ;;  %v63_v5 = vsub.f32 %v56_v1, %v60_v2  ;;  %v62_v6 = vld [vmem:[#allocation5 + $0x11] ss:$2 sm:$0x3] }
  0x36   :  { %v71_v3 = vshrl.u32 %v70_v0, 7  ;;  %v64_v19 = vsub.f32 %v58_v4, %v62_v6  ;;  %v52_v23 = vld [vmem:[#allocation2 + $0x8] sm:$0xff]  ;;  %v53_v27 = vld [vmem:[#allocation2 + $0x10] sm:$0xff]  ;;  %v54_v38 = vld [vmem:[#allocation2 + $0x18] sm:$0xff]  ;;  %vm158_vm1 = vcmask 388096   ;;  %s65_s1 = sld [smem:[#allocation7]] }
  0x37   :  { %v55_v47 = vld [vmem:[#allocation2 + $0x20] sm:$0xff]  ;;  %s188_s2 = sld [smem:[#allocation7 + $0x1]]  ;;  %vm174_vm2 = vcmask 3072   ;;  %vm179_vm3 = vcmask 11272  }
  0x38   :  { %v72_v7 = vsub.s32 0, %v71_v3  ;;  %v76_v8 = vsub.s32 1, %v71_v3  ;;  %v80_v9 = vsub.s32 2, %v71_v3  ;;  %v84_v10 = vsub.s32 3, %v71_v3 }
  0x39   :  { %v88_v11 = vsub.s32 4, %v71_v3  ;;  %v92_v12 = vsub.s32 5, %v71_v3  ;;  %v96_v13 = vsub.s32 6, %v71_v3  ;;  %v100_v17 = vsub.s32 7, %v71_v3 }
  0x3a   :  { %v73_v14 = vrot.slane %v63_v5, %v72_v7  ;;  %v77_v15 = vrot.slane %v63_v5, %v76_v8  ;;  %v81_v16 = vrot.slane %v63_v5, %v80_v9  ;;  %v85_v20 = vrot.slane %v63_v5, %v84_v10 }
  0x3b   :  { %v89_v21 = vrot.slane %v63_v5, %v88_v11  ;;  %v93_v22 = vrot.slane %v63_v5, %v92_v12  ;;  %v97_v24 = vrot.slane %v63_v5, %v96_v13  ;;  %v101_v25 = vrot.slane %v63_v5, %v100_v17 }
  0x3c   :  { %v110_v26 = vcombine.low %v73_v14, %v77_v15  ;;  %v111_v28 = vcombine.low %v81_v16, %v85_v20  ;;  %v105_v31 = vrot.slane %v64_v19, %v72_v7  ;;  %v109_v32 = vrot.slane %v64_v19, %v76_v8 }
  0x3d   :  { %v112_v29 = vcombine.low %v89_v21, %v93_v22  ;;  %v113_v34 = vcombine.low %v97_v24, %v101_v25  ;;  %s67_s13 = ssub.f32 %s65_s1, %s188_s2 }
  0x3e   :  { %v120_v30 = vmul.f32 %v110_v26, %v51_v18  ;;  %v121_v33 = vmul.f32 %v111_v28, %v52_v23  ;;  %v114_v43 = vcombine.low %v105_v31, %v109_v32 }
  0x3f   :  { %v122_v35 = vmul.f32 %v112_v29, %v53_v27  ;;  %v123_v44 = vmul.f32 %v113_v34, %v54_v38  ;;  %v163_v1 = vstv %s67_s13 }
  0x40   :  { %v130_v36 = vcombine.high %v120_v30, %v120_v30  ;;  %v141_v37 = vsel %vm140_vm0, %v120_v30, 0.0  ;;  %v131_v39 = vcombine.high %v121_v33, %v121_v33  ;;  %v144_v41 = vsel %vm140_vm0, %v121_v33, 0.0 }
  0x41   :  { %v132_v45 = vcombine.high %v122_v35, %v122_v35  ;;  %v148_v49 = vsel %vm140_vm0, %v122_v35, 0.0  ;;  %v124_v51 = vmul.f32 %v114_v43, %v55_v47  ;;  %v133_v52 = vcombine.high %v123_v44, %v123_v44 }
  0x42   :  { %v142_v40 = vsel %vm140_vm0, %v130_v36, 0.0  ;;  %v146_v46 = vsel %vm140_vm0, %v131_v39, 0.0  ;;  %v152_v55 = vsel %vm140_vm0, %v123_v44, 0.0 }
  0x43   :  { %v143_v42 = vadd.f32 %v142_v40, %v141_v37  ;;  %v150_v53 = vsel %vm140_vm0, %v132_v45, 0.0  ;;  %v134_v57 = vcombine.high %v124_v51, %v124_v51  ;;  %v154_v58 = vsel %vm140_vm0, %v133_v52, 0.0 }
  0x44   :  { %v156_v60 = vsel %vm140_vm0, %v124_v51, 0.0 }
  0x45   :  { %v145_v48 = vadd.f32 %v144_v41, %v143_v42  ;;  %v159_v62 = vsel %vm158_vm1, %v134_v57, 0.0 }
  0x47   :  { %v147_v50 = vadd.f32 %v146_v46, %v145_v48 }
  0x49   :  { %v149_v54 = vadd.f32 %v148_v49, %v147_v50 }
  0x4b   :  { %v151_v56 = vadd.f32 %v150_v53, %v149_v54 }
  0x4d   :  { %v153_v59 = vadd.f32 %v152_v55, %v151_v56 }
  0x4f   :  { %v155_v61 = vadd.f32 %v154_v58, %v153_v59 }
  0x51   :  { %v157_v63 = vadd.f32 %v156_v60, %v155_v61 }
  0x53   :  { %v160_v0 = vadd.f32 %v159_v62, %v157_v63 }
  0x55   :  { %161 = vadd.xlane.f32.xlu0 %v160_v0 }
  0xe2   :  { %v162_v2 = vpop.xlane.xlu0 %161 }
  0xe3   :  { %v164_v3 = vadd.f32 %v163_v1, %v162_v2 }
  0xe5   :  { %v165_v4 = vand.u32 2147483647, %v164_v3  ;;  %v176_v9 = vsub.f32 0.0, %v164_v3  ;;  %v172_v12 = vmin.f32 %v164_v3, 0.0 }
  0xe7   :  { %v166_v5 = vsub.f32 0.0, %v165_v4  ;;  %v177_v13 = vmin.f32 %v176_v9, 0.0 }
  0xe9   :  { %v167_v6 = vmul.f32 1.442695, %v166_v5 }
  0xeb   :  { %192 = vpow2.f32 %v167_v6 }
  0xf5   :  { %v193_v7 = vpop.eup %192 }
  0xf6   :  { %v169_v8 = vadd.f32 1.0, %v193_v7 }
  0xf8   :  { %194 = vlog2.f32 %v169_v8 }
 0x102   :  { %v195_v10 = vpop.eup %194 }
 0x103   :  { %v171_v11 = vmul.f32 0.6931472, %v195_v10 }
 0x105   :  { %v173_v14 = vsub.f32 %v172_v12, %v171_v11  ;;  %v178_v15 = vsub.f32 %v177_v13, %v171_v11 }
 0x107   :  { %175 = vst.msk [vmem:[%s326_s3] sm:$0xf] %vm174_vm2, %v173_v14 }
 0x108   :  { %180 = vst.msk [vmem:[%s326_s3] sm:$0xf] %vm179_vm3, %v178_v15 }
 0x109   :  { %185 = vsyncpa [#allocation3], 1 }
 0x10a   :  { %186 = vsyncpa [#allocation6], 1 }
 0x10b   :  { %187 = vsyncpa [#allocation4], 1 }

</bundles_post_ra>
